<compile_context>
chip_gen: v7x
topology: tpu7x:2x2x1
jax: 0.10.0
libtpu: 0.0.40
codegen_flags: <defaults>
</compile_context>

<pallas_src>
import jax
import jax.numpy as jnp
from jax.experimental import pallas as pl
from jax.experimental.pallas import tpu as pltpu


def _ffn_kernel(x_ref, w1_ref, b1_ref, w2_ref, b2_ref, w3_ref, b3_ref, o_ref):
    # Layer 1: [TB, D_in] @ [D_in, 16] + [1, 16], ReLU  (h1 stays in vregs)
    h1 = jnp.dot(x_ref[...], w1_ref[...], preferred_element_type=jnp.float32)
    h1 = jnp.maximum(h1 + b1_ref[...], 0.0)
    # Layer 2: [TB, 16] @ [16, 32] + [1, 32], ReLU
    h2 = jnp.dot(h1, w2_ref[...], preferred_element_type=jnp.float32)
    h2 = jnp.maximum(h2 + b2_ref[...], 0.0)
    # Layer 3: [TB, 32] @ [32, D_out_padded] + [1, D_out_padded]  (lane-dense store)
    o = jnp.dot(h2, w3_ref[...], preferred_element_type=jnp.float32)
    o_ref[...] = (o + b3_ref[...]).astype(o_ref.dtype)


def ffn_mnist_forward(x_nchw, params, *, batch_tile=1024):
    """Forward pass of FFNMnist.

    x_nchw: [B, C, H, W] float32 (NCHW, like PyTorch)
    params: dict with w1 [D_in,16], b1 [16], w2 [16,32], b2 [32],
            w3 [32,D_out], b3 [D_out]  (weights stored as [in, out], i.e. torch W.T)
    returns: [B, D_out] float32
    """
    B = x_nchw.shape[0]
    x = x_nchw.reshape(B, -1).astype(jnp.float32)   # matches xb.view(xb.size(0), -1)
    d_in = x.shape[1]

    w1 = params["w1"].astype(jnp.float32)
    b1 = params["b1"].reshape(1, -1).astype(jnp.float32)
    w2 = params["w2"].astype(jnp.float32)
    b2 = params["b2"].reshape(1, -1).astype(jnp.float32)
    w3 = params["w3"].astype(jnp.float32)
    b3 = params["b3"].reshape(1, -1).astype(jnp.float32)
    d_out = w3.shape[1]

    # Lane-dense output: pad final layer to a multiple of 128 lanes so the HBM
    # writeback is unmasked full vector stores. Padded columns (weight=0, bias=0)
    # are sliced away after the call — pure layout plumbing, no real compute.
    d_out_p = max(128, pl.cdiv(d_out, 128) * 128)
    if d_out_p != d_out:
        w3 = jnp.pad(w3, ((0, 0), (0, d_out_p - d_out)))
        b3 = jnp.pad(b3, ((0, 0), (0, d_out_p - d_out)))

    # Batch tiling: one grid step per TB rows; Pallas double-buffers the x DMA.
    if B <= batch_tile:
        tb = B          # single grid step; block == full array dims (no (8,128) issue)
        b_pad = B
    else:
        tb = batch_tile
        b_pad = pl.cdiv(B, tb) * tb
        if b_pad != B:
            x = jnp.pad(x, ((0, b_pad - B), (0, 0)))
    grid = (b_pad // tb,)

    flops = 2 * b_pad * (d_in * 16 + 16 * 32 + 32 * d_out_p)
    bytes_accessed = 4 * (b_pad * d_in + b_pad * d_out_p
                          + w1.size + b1.size + w2.size + b2.size + w3.size + b3.size)

    out = pl.pallas_call(
        _ffn_kernel,
        out_shape=jax.ShapeDtypeStruct((b_pad, d_out_p), jnp.float32),
        grid=grid,
        in_specs=[
            pl.BlockSpec((tb, d_in), lambda i: (i, 0)),   # x: streamed per batch tile
            pl.BlockSpec(w1.shape, lambda i: (0, 0)),      # weights/biases: VMEM-resident
            pl.BlockSpec(b1.shape, lambda i: (0, 0)),
            pl.BlockSpec(w2.shape, lambda i: (0, 0)),
            pl.BlockSpec(b2.shape, lambda i: (0, 0)),
            pl.BlockSpec(w3.shape, lambda i: (0, 0)),
            pl.BlockSpec(b3.shape, lambda i: (0, 0)),
        ],
        out_specs=pl.BlockSpec((tb, d_out_p), lambda i: (i, 0)),
        compiler_params=pltpu.CompilerParams(
            dimension_semantics=("parallel",),   # v7x: shard batch tiles across 2 TCs
        ),
        cost_estimate=pl.CostEstimate(
            flops=flops, transcendentals=0, bytes_accessed=bytes_accessed),
    )(x, w1, b1, w2, b2, w3, b3)
    return out[:B, :d_out]


def init_params(key, dim_in, dim_out):
    """Deterministic init mimicking nn.Linear's uniform(-1/sqrt(fan_in)) scale.

    Weights are stored as [in_features, out_features] (transposed vs torch).
    """
    k = jax.random.split(key, 6)

    def linear(kw, kb, fan_in, fan_out):
        bound = 1.0 / jnp.sqrt(fan_in)
        w = jax.random.uniform(kw, (fan_in, fan_out), jnp.float32, -bound, bound)
        b = jax.random.uniform(kb, (fan_out,), jnp.float32, -bound, bound)
        return w, b

    w1, b1 = linear(k[0], k[1], dim_in, 16)
    w2, b2 = linear(k[2], k[3], 16, 32)
    w3, b3 = linear(k[4], k[5], 32, dim_out)
    return {"w1": w1, "b1": b1, "w2": w2, "b2": b2, "w3": w3, "b3": b3}


def _reference(x_nchw, params):
    xf = x_nchw.reshape(x_nchw.shape[0], -1)
    h1 = jnp.maximum(xf @ params["w1"] + params["b1"], 0.0)
    h2 = jnp.maximum(h1 @ params["w2"] + params["b2"], 0.0)
    return h2 @ params["w3"] + params["b3"]


if __name__ == "__main__":
    key = jax.random.PRNGKey(0)
    k_x, k_p, k_x2 = jax.random.split(key, 3)

    # Small MNIST-like input: batch=2, channels=4, spatial 16x16 (NCHW)
    B, C, H, W = 2, 4, 16, 16
    dim_in = C * H * W        # 1024
    dim_out = 10

    x = jax.random.normal(k_x, (B, C, H, W), jnp.float32)
    params = init_params(k_p, dim_in, dim_out)

    out = ffn_mnist_forward(x, params)
    out = jax.block_until_ready(out)
    ref = _reference(x, params)
    assert out.shape == (B, dim_out)
    assert jnp.allclose(out, ref, atol=1e-4, rtol=1e-4)

    # Also exercise the multi-tile (grid > 1) + batch-padding path with a small tile.
    B2 = 20
    x2 = jax.random.normal(k_x2, (B2, C, H, W), jnp.float32)
    out2 = jax.block_until_ready(ffn_mnist_forward(x2, params, batch_tile=8))
    ref2 = _reference(x2, params)
    assert out2.shape == (B2, dim_out)
    assert jnp.allclose(out2, ref2, atol=1e-4, rtol=1e-4)

    print("KERNEL_OK")
</pallas_src>

<mosaic_0001>
module attributes {stable_mosaic.version = 11 : i64} {
  func.func @_ffn_kernel(%arg0: i32, %arg1: memref<2x1024xf32, #tpu.memory_space<vmem>>, %arg2: memref<1024x16xf32, #tpu.memory_space<vmem>>, %arg3: memref<1x16xf32, #tpu.memory_space<vmem>>, %arg4: memref<16x32xf32, #tpu.memory_space<vmem>>, %arg5: memref<1x32xf32, #tpu.memory_space<vmem>>, %arg6: memref<32x128xf32, #tpu.memory_space<vmem>>, %arg7: memref<1x128xf32, #tpu.memory_space<vmem>>, %arg8: memref<2x128xf32, #tpu.memory_space<vmem>>) attributes {dimension_semantics = [#tpu.dimension_semantics<parallel>], iteration_bounds = array<i64: 1>, scalar_prefetch = 0 : i64, scratch_operands = 0 : i64, tpu.core_type = #tpu.core_type<tc>, window_params = [{transform_indices = @transform_0, window_bounds = array<i64: 2, 1024>}, {pipeline_mode = #tpu.pipeline_mode<synchronous>, transform_indices = @transform_1, window_bounds = array<i64: 1024, 16>}, {pipeline_mode = #tpu.pipeline_mode<synchronous>, transform_indices = @transform_2, window_bounds = array<i64: 1, 16>}, {pipeline_mode = #tpu.pipeline_mode<synchronous>, transform_indices = @transform_3, window_bounds = array<i64: 16, 32>}, {pipeline_mode = #tpu.pipeline_mode<synchronous>, transform_indices = @transform_4, window_bounds = array<i64: 1, 32>}, {pipeline_mode = #tpu.pipeline_mode<synchronous>, transform_indices = @transform_5, window_bounds = array<i64: 32, 128>}, {pipeline_mode = #tpu.pipeline_mode<synchronous>, transform_indices = @transform_6, window_bounds = array<i64: 1, 128>}, {transform_indices = @transform_7, window_bounds = array<i64: 2, 128>}]} {
    %c0 = arith.constant 0 : index
    %c0_0 = arith.constant 0 : index
    %0 = vector.load %arg1[%c0, %c0_0] : memref<2x1024xf32, #tpu.memory_space<vmem>>, vector<2x1024xf32>
    %c0_1 = arith.constant 0 : index
    %c0_2 = arith.constant 0 : index
    %1 = vector.load %arg2[%c0_1, %c0_2] : memref<1024x16xf32, #tpu.memory_space<vmem>>, vector<1024x16xf32>
    %cst = arith.constant dense<0.000000e+00> : vector<2x16xf32>
    %2 = tpu.matmul %0, %1, %cst {dimension_numbers = #tpu.dot_dimension_numbers<[1], [0], [0], [1], [0, 0, 1, 1], [], []>} : vector<2x1024xf32>, vector<1024x16xf32>, vector<2x16xf32> -> vector<2x16xf32>
    %c0_3 = arith.constant 0 : index
    %c0_4 = arith.constant 0 : index
    %3 = vector.load %arg3[%c0_3, %c0_4] : memref<1x16xf32, #tpu.memory_space<vmem>>, vector<1x16xf32>
    %4 = vector.broadcast %3 : vector<1x16xf32> to vector<2x16xf32>
    %5 = arith.addf %2, %4 : vector<2x16xf32>
    %cst_5 = arith.constant 0.000000e+00 : f32
    %6 = vector.broadcast %cst_5 : f32 to vector<2x16xf32>
    %7 = arith.maximumf %5, %6 : vector<2x16xf32>
    %c0_6 = arith.constant 0 : index
    %c0_7 = arith.constant 0 : index
    %8 = vector.load %arg4[%c0_6, %c0_7] : memref<16x32xf32, #tpu.memory_space<vmem>>, vector<16x32xf32>
    %cst_8 = arith.constant dense<0.000000e+00> : vector<2x32xf32>
    %9 = tpu.matmul %7, %8, %cst_8 {dimension_numbers = #tpu.dot_dimension_numbers<[1], [0], [0], [1], [0, 0, 1, 1], [], []>} : vector<2x16xf32>, vector<16x32xf32>, vector<2x32xf32> -> vector<2x32xf32>
    %c0_9 = arith.constant 0 : index
    %c0_10 = arith.constant 0 : index
    %10 = vector.load %arg5[%c0_9, %c0_10] : memref<1x32xf32, #tpu.memory_space<vmem>>, vector<1x32xf32>
    %11 = vector.broadcast %10 : vector<1x32xf32> to vector<2x32xf32>
    %12 = arith.addf %9, %11 : vector<2x32xf32>
    %cst_11 = arith.constant 0.000000e+00 : f32
    %13 = vector.broadcast %cst_11 : f32 to vector<2x32xf32>
    %14 = arith.maximumf %12, %13 : vector<2x32xf32>
    %c0_12 = arith.constant 0 : index
    %c0_13 = arith.constant 0 : index
    %15 = vector.load %arg6[%c0_12, %c0_13] : memref<32x128xf32, #tpu.memory_space<vmem>>, vector<32x128xf32>
    %cst_14 = arith.constant dense<0.000000e+00> : vector<2x128xf32>
    %16 = tpu.matmul %14, %15, %cst_14 {dimension_numbers = #tpu.dot_dimension_numbers<[1], [0], [0], [1], [0, 0, 1, 1], [], []>} : vector<2x32xf32>, vector<32x128xf32>, vector<2x128xf32> -> vector<2x128xf32>
    %c0_15 = arith.constant 0 : index
    %c0_16 = arith.constant 0 : index
    %17 = vector.load %arg7[%c0_15, %c0_16] : memref<1x128xf32, #tpu.memory_space<vmem>>, vector<1x128xf32>
    %18 = vector.broadcast %17 : vector<1x128xf32> to vector<2x128xf32>
    %19 = arith.addf %16, %18 : vector<2x128xf32>
    %c0_17 = arith.constant 0 : index
    %c0_18 = arith.constant 0 : index
    %20 = vector.load %arg8[%c0_17, %c0_18] : memref<2x128xf32, #tpu.memory_space<vmem>>, vector<2x128xf32>
    tpu.vector_store %arg8[%c0_17, %c0_18], %19 {strides = array<i32>} : memref<2x128xf32, #tpu.memory_space<vmem>>, vector<2x128xf32>,
    return
  }
  func.func @transform_0(%arg0: i32) -> (i32, i32) {
    %c0_i32 = arith.constant 0 : i32
    %c0_i32_0 = arith.constant 0 : i32
    return %arg0, %c0_i32 : i32, i32
  }
  func.func @transform_1(%arg0: i32) -> (i32, i32) {
    %c0_i32 = arith.constant 0 : i32
    %c0_i32_0 = arith.constant 0 : i32
    %c0_i32_1 = arith.constant 0 : i32
    return %c0_i32, %c0_i32_0 : i32, i32
  }
  func.func @transform_2(%arg0: i32) -> (i32, i32) {
    %c0_i32 = arith.constant 0 : i32
    %c0_i32_0 = arith.constant 0 : i32
    %c0_i32_1 = arith.constant 0 : i32
    return %c0_i32, %c0_i32_0 : i32, i32
  }
  func.func @transform_3(%arg0: i32) -> (i32, i32) {
    %c0_i32 = arith.constant 0 : i32
    %c0_i32_0 = arith.constant 0 : i32
    %c0_i32_1 = arith.constant 0 : i32
    return %c0_i32, %c0_i32_0 : i32, i32
  }
  func.func @transform_4(%arg0: i32) -> (i32, i32) {
    %c0_i32 = arith.constant 0 : i32
    %c0_i32_0 = arith.constant 0 : i32
    %c0_i32_1 = arith.constant 0 : i32
    return %c0_i32, %c0_i32_0 : i32, i32
  }
  func.func @transform_5(%arg0: i32) -> (i32, i32) {
    %c0_i32 = arith.constant 0 : i32
    %c0_i32_0 = arith.constant 0 : i32
    %c0_i32_1 = arith.constant 0 : i32
    return %c0_i32, %c0_i32_0 : i32, i32
  }
  func.func @transform_6(%arg0: i32) -> (i32, i32) {
    %c0_i32 = arith.constant 0 : i32
    %c0_i32_0 = arith.constant 0 : i32
    %c0_i32_1 = arith.constant 0 : i32
    return %c0_i32, %c0_i32_0 : i32, i32
  }
  func.func @transform_7(%arg0: i32) -> (i32, i32) {
    %c0_i32 = arith.constant 0 : i32
    %c0_i32_0 = arith.constant 0 : i32
    return %arg0, %c0_i32 : i32, i32
  }
}

</mosaic_0001>

<bundles_post_ra>
// kernel: tpu_custom_call.1
= control target key start
LH: loop header
LB: loop body
LE: loop exit
PB: predicated region body
PF: predicated region fallthrough
CT: control target
= control target key end

     0   :  { %v1012_v47 = vmov 1983009808   ;;  %v170_v49 = vlaneseq  ;;  %s1497_s0 = inlined_call_operand.vmem [shape: f32[2,1024], index: 0, kind: input, shape index: {}]   ;;  %s1498_s1 = inlined_call_operand.vmem [shape: f32[1024,16], index: 1, kind: input, shape index: {}]   ;;  %s1499_s2 = inlined_call_operand.vmem [shape: f32[1,16], index: 2, kind: input, shape index: {}]   ;;  %s1500_s3 = inlined_call_operand.vmem [shape: f32[16,32], index: 3, kind: input, shape index: {}]   ;;  %s1501_s4 = inlined_call_operand.vmem [shape: f32[1,32], index: 4, kind: input, shape index: {}]   ;;  %s1502_s5 = inlined_call_operand.vmem [shape: f32[32,128], index: 5, kind: input, shape index: {}]   ;;  %s1503_s6 = inlined_call_operand.vmem [shape: f32[1,128], index: 6, kind: input, shape index: {}]   ;;  %s1504_s7 = inlined_call_operand.hbm [shape: f32[2,128], index: 7, kind: output, shape index: {}]  }
   0x1   :  { %v45_v0 = vld [vmem:[%s1498_s1 + $0x80] sm:$0xff]  ;;  %v46_v1 = vld [vmem:[%s1498_s1 + $0x88] sm:$0xff]  ;;  %v47_v11 = vld [vmem:[%s1498_s1 + $0x90] sm:$0xff]  ;;  %v168_v48 = vunpack.c.l.s4 %v1012_v47 }
   0x2   :  { %v29_v2 = vld [vmem:[%s1498_s1] sm:$0xff]  ;;  %v844_v3 = vpack.c.bf16 %v46_v1, %v45_v0  ;;  %v30_v4 = vld [vmem:[%s1498_s1 + $0x8] sm:$0xff]  ;;  %v48_v13 = vld [vmem:[%s1498_s1 + $0x98] sm:$0xff]  ;;  %v171_v0 = vshrl.u32 %v170_v49, 7 }
   0x3   :  { %v77_v5 = vld [vmem:[%s1498_s1 + $0x180] sm:$0xff]  ;;  %v78_v6 = vld [vmem:[%s1498_s1 + $0x188] sm:$0xff]  ;;  %v846_v7 = vpack.c.bf16 %v30_v4, %v29_v2  ;;  %v31_v14 = vld [vmem:[%s1498_s1 + $0x10] sm:$0xff]  ;;  %v848_v16 = vpack.c.bf16 %v48_v13, %v47_v11  ;;  %v169_v63 = vunpack.c.0.s8 %v168_v48 }
   0x4   :  { %v876_v8 = vpack.c.bf16 %v78_v6, %v77_v5  ;;  %v61_v9 = vld [vmem:[%s1498_s1 + $0x100] sm:$0xff]  ;;  %v62_v10 = vld [vmem:[%s1498_s1 + $0x108] sm:$0xff]  ;;  %845 = vmatprep.subr.bf16.mxu0 %v844_v3  ;;  %v32_v15 = vld [vmem:[%s1498_s1 + $0x18] sm:$0xff] }
   0x5   :  { %v878_v12 = vpack.c.bf16 %v62_v10, %v61_v9  ;;  %847 = vmatpush3.bf16.msra.mxu0 %v846_v7  ;;  %v850_v17 = vpack.c.bf16 %v32_v15, %v31_v14  ;;  %v79_v18 = vld [vmem:[%s1498_s1 + $0x190] sm:$0xff]  ;;  %v80_v19 = vld [vmem:[%s1498_s1 + $0x198] sm:$0xff]  ;;  %v49_v23 = vld [vmem:[%s1498_s1 + $0xa0] sm:$0xff]  ;;  %v1207_v13 = vsub.s32 %v169_v63, %v171_v0 }
   0x6   :  { %877 = vmatprep.subr.bf16.mxu1 %v876_v8  ;;  %v63_v20 = vld [vmem:[%s1498_s1 + $0x110] sm:$0xff]  ;;  %v880_v21 = vpack.c.bf16 %v80_v19, %v79_v18  ;;  %v64_v22 = vld [vmem:[%s1498_s1 + $0x118] sm:$0xff]  ;;  %v50_v24 = vld [vmem:[%s1498_s1 + $0xa8] sm:$0xff]  ;;  %849 = vmatprep.subr.bf16.mxu0 %v848_v16 }
   0x7   :  { %879 = vmatpush3.bf16.msra.mxu1 %v878_v12  ;;  %v882_v25 = vpack.c.bf16 %v64_v22, %v63_v20  ;;  %v852_v26 = vpack.c.bf16 %v50_v24, %v49_v23  ;;  %v33_v27 = vld [vmem:[%s1498_s1 + $0x20] sm:$0xff]  ;;  %v34_v28 = vld [vmem:[%s1498_s1 + $0x28] sm:$0xff]  ;;  %v51_v35 = vld [vmem:[%s1498_s1 + $0xb0] sm:$0xff] }
   0x8   :  { %v81_v29 = vld [vmem:[%s1498_s1 + $0x1a0] sm:$0xff]  ;;  %881 = vmatprep.subr.bf16.mxu1 %v880_v21  ;;  %v82_v30 = vld [vmem:[%s1498_s1 + $0x1a8] sm:$0xff]  ;;  %v854_v33 = vpack.c.bf16 %v34_v28, %v33_v27  ;;  %v52_v36 = vld [vmem:[%s1498_s1 + $0xb8] sm:$0xff] }
   0x9   :  { %v65_v31 = vld [vmem:[%s1498_s1 + $0x120] sm:$0xff]  ;;  %v66_v32 = vld [vmem:[%s1498_s1 + $0x128] sm:$0xff]  ;;  %851 = vmatpush3.bf16.msra.mxu0 %v850_v17  ;;  %v884_v34 = vpack.c.bf16 %v82_v30, %v81_v29  ;;  %v35_v37 = vld [vmem:[%s1498_s1 + $0x30] sm:$0xff]  ;;  %v856_v39 = vpack.c.bf16 %v52_v36, %v51_v35 }
   0xa   :  { %853 = vmatprep.subr.bf16.mxu0 %v852_v26  ;;  %v886_v38 = vpack.c.bf16 %v66_v32, %v65_v31  ;;  %v36_v40 = vld [vmem:[%s1498_s1 + $0x38] sm:$0xff]  ;;  %v83_v41 = vld [vmem:[%s1498_s1 + $0x1b0] sm:$0xff]  ;;  %v53_v46 = vld [vmem:[%s1498_s1 + $0xc0] sm:$0xff] }
   0xb   :  { %883 = vmatpush3.bf16.msra.mxu1 %v882_v25  ;;  %v84_v42 = vld [vmem:[%s1498_s1 + $0x1b8] sm:$0xff]  ;;  %v67_v44 = vld [vmem:[%s1498_s1 + $0x130] sm:$0xff]  ;;  %v54_v50 = vld [vmem:[%s1498_s1 + $0xc8] sm:$0xff]  ;;  %v858_v51 = vpack.c.bf16 %v36_v40, %v35_v37 }
   0xc   :  { %885 = vmatprep.subr.bf16.mxu1 %v884_v34  ;;  %v888_v43 = vpack.c.bf16 %v84_v42, %v83_v41  ;;  %v68_v45 = vld [vmem:[%s1498_s1 + $0x138] sm:$0xff]  ;;  %v85_v52 = vld [vmem:[%s1498_s1 + $0x1c0] sm:$0xff]  ;;  %v86_v53 = vld [vmem:[%s1498_s1 + $0x1c8] sm:$0xff]  ;;  %v860_v55 = vpack.c.bf16 %v54_v50, %v53_v46 }
   0xd   :  { %855 = vmatpush3.bf16.msra.mxu0 %v854_v33  ;;  %v890_v54 = vpack.c.bf16 %v68_v45, %v67_v44  ;;  %v37_v56 = vld [vmem:[%s1498_s1 + $0x40] sm:$0xff]  ;;  %v38_v57 = vld [vmem:[%s1498_s1 + $0x48] sm:$0xff]  ;;  %v892_v59 = vpack.c.bf16 %v86_v53, %v85_v52  ;;  %v55_v61 = vld [vmem:[%s1498_s1 + $0xd0] sm:$0xff] }
   0xe   :  { %857 = vmatprep.subr.bf16.mxu0 %v856_v39  ;;  %v69_v58 = vld [vmem:[%s1498_s1 + $0x140] sm:$0xff]  ;;  %v70_v60 = vld [vmem:[%s1498_s1 + $0x148] sm:$0xff]  ;;  %v56_v62 = vld [vmem:[%s1498_s1 + $0xd8] sm:$0xff]  ;;  %v862_v3 = vpack.c.bf16 %v38_v57, %v37_v56 }
   0xf   :  { %887 = vmatpush3.bf16.msra.mxu1 %v886_v38  ;;  %v87_v1 = vld [vmem:[%s1498_s1 + $0x1d0] sm:$0xff]  ;;  %v88_v2 = vld [vmem:[%s1498_s1 + $0x1d8] sm:$0xff]  ;;  %v894_v4 = vpack.c.bf16 %v70_v60, %v69_v58  ;;  %v864_v5 = vpack.c.bf16 %v56_v62, %v55_v61  ;;  %v57_v11 = vld [vmem:[%s1498_s1 + $0xe0] sm:$0xff] }
  0x10   :  { %889 = vmatprep.subr.bf16.mxu1 %v888_v43  ;;  %v39_v6 = vld [vmem:[%s1498_s1 + $0x50] sm:$0xff]  ;;  %v40_v7 = vld [vmem:[%s1498_s1 + $0x58] sm:$0xff]  ;;  %v896_v9 = vpack.c.bf16 %v88_v2, %v87_v1  ;;  %v58_v12 = vld [vmem:[%s1498_s1 + $0xe8] sm:$0xff] }
  0x11   :  { %859 = vmatpush3.bf16.msra.mxu0 %v858_v51  ;;  %v71_v8 = vld [vmem:[%s1498_s1 + $0x150] sm:$0xff]  ;;  %v72_v10 = vld [vmem:[%s1498_s1 + $0x158] sm:$0xff]  ;;  %v89_v14 = vld [vmem:[%s1498_s1 + $0x1e0] sm:$0xff]  ;;  %v866_v16 = vpack.c.bf16 %v40_v7, %v39_v6  ;;  %v868_v19 = vpack.c.bf16 %v58_v12, %v57_v11 }
  0x12   :  { %861 = vmatprep.subr.bf16.mxu0 %v860_v55  ;;  %v90_v15 = vld [vmem:[%s1498_s1 + $0x1e8] sm:$0xff]  ;;  %v41_v17 = vld [vmem:[%s1498_s1 + $0x60] sm:$0xff]  ;;  %v898_v18 = vpack.c.bf16 %v72_v10, %v71_v8  ;;  %v59_v25 = vld [vmem:[%s1498_s1 + $0xf0] sm:$0xff] }
  0x13   :  { %891 = vmatpush3.bf16.msra.mxu1 %v890_v54  ;;  %v42_v20 = vld [vmem:[%s1498_s1 + $0x68] sm:$0xff]  ;;  %v73_v21 = vld [vmem:[%s1498_s1 + $0x160] sm:$0xff]  ;;  %v900_v23 = vpack.c.bf16 %v90_v15, %v89_v14  ;;  %v60_v26 = vld [vmem:[%s1498_s1 + $0xf8] sm:$0xff] }
  0x14   :  { %893 = vmatprep.subr.bf16.mxu1 %v892_v59  ;;  %v27_v22 = vld [vmem:[%s1497_s0] sm:$0xff]  ;;  %v74_v24 = vld [vmem:[%s1498_s1 + $0x168] sm:$0xff]  ;;  %v91_v29 = vld [vmem:[%s1498_s1 + $0x1f0] sm:$0xff]  ;;  %v870_v31 = vpack.c.bf16 %v42_v20, %v41_v17  ;;  %v872_v35 = vpack.c.bf16 %v60_v26, %v59_v25 }
  0x15   :  { %863 = vmatpush3.bf16.msra.mxu0 %v862_v3  ;;  %v173_v27 = vrot.slane %v27_v22, %v1207_v13  ;;  %v166_v28 = vcombine.high %v27_v22, %v27_v22  ;;  %v92_v30 = vld [vmem:[%s1498_s1 + $0x1f8] sm:$0xff]  ;;  %v902_v34 = vpack.c.bf16 %v74_v24, %v73_v21  ;;  %v43_v36 = vld [vmem:[%s1498_s1 + $0x70] sm:$0xff]  ;;  %v109_v41 = vld [vmem:[%s1498_s1 + $0x280] sm:$0xff] }
  0x16   :  { %865 = vmatprep.subr.bf16.mxu0 %v864_v5  ;;  %v44_v37 = vld [vmem:[%s1498_s1 + $0x78] sm:$0xff]  ;;  %v75_v38 = vld [vmem:[%s1498_s1 + $0x170] sm:$0xff]  ;;  %v904_v39 = vpack.c.bf16 %v92_v30, %v91_v29  ;;  %v110_v42 = vld [vmem:[%s1498_s1 + $0x288] sm:$0xff] }
  0x17   :  { %895 = vmatpush3.bf16.msra.mxu1 %v894_v4  ;;  %v181_v32 = vcombine.high %v173_v27, %v173_v27  ;;  %v180_v33 = vrot.slane %v166_v28, %v1207_v13  ;;  %v76_v40 = vld [vmem:[%s1498_s1 + $0x178] sm:$0xff]  ;;  %v141_v44 = vld [vmem:[%s1498_s1 + $0x380] sm:$0xff]  ;;  %v142_v45 = vld [vmem:[%s1498_s1 + $0x388] sm:$0xff]  ;;  %v874_v46 = vpack.c.bf16 %v44_v37, %v43_v36  ;;  %v908_v48 = vpack.c.bf16 %v110_v42, %v109_v41 }
  0x18   :  { %897 = vmatprep.subr.bf16.mxu1 %v896_v9  ;;  %v906_v47 = vpack.c.bf16 %v76_v40, %v75_v38  ;;  %v93_v49 = vld [vmem:[%s1498_s1 + $0x200] sm:$0xff]  ;;  %v94_v50 = vld [vmem:[%s1498_s1 + $0x208] sm:$0xff]  ;;  %v940_v52 = vpack.c.bf16 %v142_v45, %v141_v44  ;;  %v111_v54 = vld [vmem:[%s1498_s1 + $0x290] sm:$0xff] }
  0x19   :  { %867 = vmatpush3.bf16.msra.mxu0 %v866_v16  ;;  %272 = vmatprep.mubr.f32.mxu0 %v181_v32  ;;  %v182_v43 = vcombine.high %v180_v33, %v180_v33  ;;  %v125_v51 = vld [vmem:[%s1498_s1 + $0x300] sm:$0xff]  ;;  %v126_v53 = vld [vmem:[%s1498_s1 + $0x308] sm:$0xff]  ;;  %v112_v55 = vld [vmem:[%s1498_s1 + $0x298] sm:$0xff]  ;;  %v910_v58 = vpack.c.bf16 %v94_v50, %v93_v49 }
  0x1a   :  { %869 = vmatprep.subr.bf16.mxu0 %v868_v19  ;;  %v143_v56 = vld [vmem:[%s1498_s1 + $0x390] sm:$0xff]  ;;  %v144_v57 = vld [vmem:[%s1498_s1 + $0x398] sm:$0xff]  ;;  %v942_v59 = vpack.c.bf16 %v126_v53, %v125_v51  ;;  %v912_v60 = vpack.c.bf16 %v112_v55, %v111_v54  ;;  %v113_v2 = vld [vmem:[%s1498_s1 + $0x2a0] sm:$0xff] }
  0x1b   :  { %899 = vmatpush3.bf16.msra.mxu1 %v898_v18  ;;  %342 = vmatprep.mubr.f32.mxu1 %v182_v43  ;;  %v95_v61 = vld [vmem:[%s1498_s1 + $0x210] sm:$0xff]  ;;  %v96_v62 = vld [vmem:[%s1498_s1 + $0x218] sm:$0xff]  ;;  %v944_v0 = vpack.c.bf16 %v144_v57, %v143_v56  ;;  %v114_v3 = vld [vmem:[%s1498_s1 + $0x2a8] sm:$0xff] }
  0x1c   :  { %901 = vmatprep.subr.bf16.mxu1 %v900_v23  ;;  %v127_v63 = vld [vmem:[%s1498_s1 + $0x310] sm:$0xff]  ;;  %v128_v1 = vld [vmem:[%s1498_s1 + $0x318] sm:$0xff]  ;;  %v145_v4 = vld [vmem:[%s1498_s1 + $0x3a0] sm:$0xff]  ;;  %v914_v6 = vpack.c.bf16 %v96_v62, %v95_v61  ;;  %v916_v8 = vpack.c.bf16 %v114_v3, %v113_v2 }
  0x1d   :  { %871 = vmatpush3.bf16.msra.mxu0 %v870_v31  ;;  %v146_v5 = vld [vmem:[%s1498_s1 + $0x3a8] sm:$0xff]  ;;  %v946_v7 = vpack.c.bf16 %v128_v1, %v127_v63  ;;  %v97_v9 = vld [vmem:[%s1498_s1 + $0x220] sm:$0xff]  ;;  %v115_v15 = vld [vmem:[%s1498_s1 + $0x2b0] sm:$0xff] }
  0x1e   :  { %873 = vmatprep.subr.bf16.mxu0 %v872_v35  ;;  %v98_v10 = vld [vmem:[%s1498_s1 + $0x228] sm:$0xff]  ;;  %v129_v11 = vld [vmem:[%s1498_s1 + $0x320] sm:$0xff]  ;;  %v948_v12 = vpack.c.bf16 %v146_v5, %v145_v4  ;;  %v116_v16 = vld [vmem:[%s1498_s1 + $0x2b8] sm:$0xff] }
  0x1f   :  { %903 = vmatpush3.bf16.msra.mxu1 %v902_v34  ;;  %v130_v14 = vld [vmem:[%s1498_s1 + $0x328] sm:$0xff]  ;;  %v147_v17 = vld [vmem:[%s1498_s1 + $0x3b0] sm:$0xff]  ;;  %v148_v18 = vld [vmem:[%s1498_s1 + $0x3b8] sm:$0xff]  ;;  %v918_v19 = vpack.c.bf16 %v98_v10, %v97_v9  ;;  %v920_v22 = vpack.c.bf16 %v116_v16, %v115_v15 }
  0x20   :  { %905 = vmatprep.subr.bf16.mxu1 %v904_v39  ;;  %v99_v20 = vld [vmem:[%s1498_s1 + $0x230] sm:$0xff]  ;;  %v950_v21 = vpack.c.bf16 %v130_v14, %v129_v11  ;;  %v100_v23 = vld [vmem:[%s1498_s1 + $0x238] sm:$0xff]  ;;  %v952_v26 = vpack.c.bf16 %v148_v18, %v147_v17  ;;  %v118_v28 = vld [vmem:[%s1498_s1 + $0x2c8] sm:$0xff] }
  0x21   :  { %875 = vmatpush3.bf16.msra.mxu0 %v874_v46  ;;  %v131_v24 = vld [vmem:[%s1498_s1 + $0x330] sm:$0xff]  ;;  %v132_v25 = vld [vmem:[%s1498_s1 + $0x338] sm:$0xff]  ;;  %v149_v29 = vld [vmem:[%s1498_s1 + $0x3c0] sm:$0xff] }
  0x22   :  { %909 = vmatprep.subr.bf16.mxu0 %v908_v48  ;;  %v150_v30 = vld [vmem:[%s1498_s1 + $0x3c8] sm:$0xff] }
  0x23   :  { %907 = vmatpush3.bf16.msra.mxu1 %v906_v47  ;;  %v28_v31 = vld [vmem:[%s1497_s0 + $0x8] sm:$0xff] }
  0x24   :  { %941 = vmatprep.subr.bf16.mxu1 %v940_v52  ;;  %273 = vmatmul.mubr.f32.vlgmr.msra.gmra.mrb[0].mxu0 %v173_v27  ;;  %v117_v27 = vld [vmem:[%s1498_s1 + $0x2c0] sm:$0xff] }
  0x25   :  { %911 = vmatpush3.bf16.msra.mxu0 %v910_v58 }
  0x26   :  { %343 = vmatmul.mubr.f32.vlgmr.msra.gmra.mrb[0].mxu1 %v180_v33  ;;  %913 = vmatprep.subr.bf16.mxu0 %v912_v60 }
  0x27   :  { %943 = vmatpush3.bf16.msra.mxu1 %v942_v59 }
  0x28   :  { %945 = vmatprep.subr.bf16.mxu1 %v944_v0 }
  0x29   :  { %915 = vmatpush3.bf16.msra.mxu0 %v914_v6 }
  0x2a   :  { %917 = vmatprep.subr.bf16.mxu0 %v916_v8 }
  0x2b   :  { %947 = vmatpush3.bf16.msra.mxu1 %v946_v7 }
  0x2c   :  { %949 = vmatprep.subr.bf16.mxu1 %v948_v12 }
  0x2d   :  { %12 = vsyncpa [#allocation3], 0  ;;  %919 = vmatpush3.bf16.msra.mxu0 %v918_v19  ;;  %v922_v32 = vpack.c.bf16 %v100_v23, %v99_v20  ;;  %v1368_v33 = vrot.slane %v28_v31, %v1207_v13  ;;  %v183_v34 = vcombine.high %v28_v31, %v28_v31  ;;  %v954_v35 = vpack.c.bf16 %v132_v25, %v131_v24  ;;  %v101_v37 = vld [vmem:[%s1498_s1 + $0x240] sm:$0xff]  ;;  %v102_v38 = vld [vmem:[%s1498_s1 + $0x248] sm:$0xff]  ;;  %s1016_s20 = smov [#allocation2]  }
  0x2e   :  { %921 = vmatprep.subr.bf16.mxu0 %v920_v22  ;;  %v924_v36 = vpack.c.bf16 %v118_v28, %v117_v27  ;;  %v133_v39 = vld [vmem:[%s1498_s1 + $0x340] sm:$0xff]  ;;  %v956_v40 = vpack.c.bf16 %v150_v30, %v149_v29  ;;  %v134_v41 = vld [vmem:[%s1498_s1 + $0x348] sm:$0xff]  ;;  %v119_v42 = vld [vmem:[%s1498_s1 + $0x2d0] sm:$0xff]  ;;  %v926_v48 = vpack.c.bf16 %v102_v38, %v101_v37  ;;  %v1013_v22 = vmov 0.0|0.0   ;;  %s665_s21 = sshll.u32 %s1016_s20, 4  ;;  %s666_s21 = int_to_ptr.vmem [resolvable:$true] %s665_s21 }
  0x2f   :  { %951 = vmatpush3.bf16.msra.mxu1 %v950_v21  ;;  %v120_v43 = vld [vmem:[%s1498_s1 + $0x2d8] sm:$0xff]  ;;  %v198_v44 = vcombine.high %v1368_v33, %v1368_v33  ;;  %v197_v45 = vrot.slane %v183_v34, %v1207_v13  ;;  %v151_v46 = vld [vmem:[%s1498_s1 + $0x3d0] sm:$0xff]  ;;  %v958_v50 = vpack.c.bf16 %v134_v41, %v133_v39  ;;  %v121_v56 = vld [vmem:[%s1498_s1 + $0x2e0] sm:$0xff]  ;;  %vm1014_vm0 = vmmov 0   ;;  %p993_p1 = scmp.lt.s32.totalorder %s666_s21, %s666_s21 }
  0x30   :  { %953 = vmatprep.subr.bf16.mxu1 %v952_v26  ;;  %v152_v47 = vld [vmem:[%s1498_s1 + $0x3d8] sm:$0xff]  ;;  %v928_v51 = vpack.c.bf16 %v120_v43, %v119_v42  ;;  %v103_v13 = vld [vmem:[%s1498_s1 + $0x250] sm:$0xff]  ;;  %v122_v57 = vld [vmem:[%s1498_s1 + $0x2e8] sm:$0xff]  ;;  %v1015_v23 = vmov 0.0   ;;  %vm498_vm1 = vcmask 130048   ;;  %vm584_vm2 = vcmask 261120  }
  0x31   :  { %923 = vmatpush3.bf16.msra.mxu0 %v922_v32  ;;  %412 = vmatprep.mubr.f32.mxu0 %v198_v44  ;;  %v199_v49 = vcombine.high %v197_v45, %v197_v45  ;;  %v104_v52 = vld [vmem:[%s1498_s1 + $0x258] sm:$0xff]  ;;  %v135_v53 = vld [vmem:[%s1498_s1 + $0x350] sm:$0xff]  ;;  %v960_v54 = vpack.c.bf16 %v152_v47, %v151_v46  ;;  %v153_v58 = vld [vmem:[%s1498_s1 + $0x3e0] sm:$0xff]  ;;  %v932_v62 = vpack.c.bf16 %v122_v57, %v121_v56 }
  0x32   :  { %925 = vmatprep.subr.bf16.mxu0 %v924_v36  ;;  %v136_v55 = vld [vmem:[%s1498_s1 + $0x358] sm:$0xff]  ;;  %v154_v59 = vld [vmem:[%s1498_s1 + $0x3e8] sm:$0xff]  ;;  %v930_v60 = vpack.c.bf16 %v104_v52, %v103_v13  ;;  %v105_v63 = vld [vmem:[%s1498_s1 + $0x260] sm:$0xff] }
  0x33   :  { %955 = vmatpush3.bf16.msra.mxu1 %v954_v35  ;;  %482 = vmatprep.mubr.f32.mxu1 %v199_v49  ;;  %v962_v61 = vpack.c.bf16 %v136_v55, %v135_v53  ;;  %v106_v0 = vld [vmem:[%s1498_s1 + $0x268] sm:$0xff]  ;;  %v137_v1 = vld [vmem:[%s1498_s1 + $0x360] sm:$0xff]  ;;  %v964_v2 = vpack.c.bf16 %v154_v59, %v153_v58  ;;  %v123_v4 = vld [vmem:[%s1498_s1 + $0x2f0] sm:$0xff] }
  0x34   :  { %957 = vmatprep.subr.bf16.mxu1 %v956_v40  ;;  %v138_v3 = vld [vmem:[%s1498_s1 + $0x368] sm:$0xff]  ;;  %v124_v5 = vld [vmem:[%s1498_s1 + $0x2f8] sm:$0xff]  ;;  %v155_v6 = vld [vmem:[%s1498_s1 + $0x3f0] sm:$0xff]  ;;  %v934_v8 = vpack.c.bf16 %v106_v0, %v105_v63 }
  0x35   :  { %927 = vmatpush3.bf16.msra.mxu0 %v926_v48  ;;  %v156_v7 = vld [vmem:[%s1498_s1 + $0x3f8] sm:$0xff]  ;;  %v966_v9 = vpack.c.bf16 %v138_v3, %v137_v1  ;;  %v936_v10 = vpack.c.bf16 %v124_v5, %v123_v4  ;;  %v107_v11 = vld [vmem:[%s1498_s1 + $0x270] sm:$0xff]  ;;  %v489_v19 = vld [vmem:[%s1500_s3] sm:$0xff] }
  0x36   :  { %929 = vmatprep.subr.bf16.mxu0 %v928_v51  ;;  %v108_v12 = vld [vmem:[%s1498_s1 + $0x278] sm:$0xff]  ;;  %v968_v14 = vpack.c.bf16 %v156_v7, %v155_v6  ;;  %v139_v15 = vld [vmem:[%s1498_s1 + $0x370] sm:$0xff]  ;;  %v490_v20 = vld [vmem:[%s1500_s3 + $0x8] sm:$0xff] }
  0x37   :  { %959 = vmatpush3.bf16.msra.mxu1 %v958_v50  ;;  %v140_v16 = vld [vmem:[%s1498_s1 + $0x378] sm:$0xff]  ;;  %v938_v17 = vpack.c.bf16 %v108_v12, %v107_v11  ;;  %v973_v21 = vpack.c.bf16 %v490_v20, %v489_v19  ;;  %v573_v24 = vld [vmem:[%s1502_s5] sm:$0xff]  ;;  %v574_v25 = vld [vmem:[%s1502_s5 + $0x8] sm:$0xff] }
  0x38   :  { %961 = vmatprep.subr.bf16.mxu1 %v960_v54  ;;  %v970_v18 = vpack.c.bf16 %v140_v16, %v139_v15  ;;  %v976_v26 = vpack.c.bf16 %v574_v25, %v573_v24  ;;  %v673_v28 = vld [vmem:[%s1499_s2] ss:$0 sm:$0xff]  ;;  %v576_v46 = vld [vmem:[%s1502_s5 + $0x18] sm:$0xff] }
  0x39   :  { %931 = vmatpush3.bf16.msra.mxu0 %v930_v60  ;;  %v674_v48 = vld [vmem:[%s1501_s4] ss:$0 sm:$0xff] }
  0x3a   :  { %933 = vmatprep.subr.bf16.mxu0 %v932_v62  ;;  %v676_v52 = vld [vmem:[%s1503_s6] ss:$0 sm:$0xff] }
  0x3b   :  { %963 = vmatpush3.bf16.msra.mxu1 %v962_v61 }
  0x3c   :  { %965 = vmatprep.subr.bf16.mxu1 %v964_v2 }
  0x3d   :  { %935 = vmatpush3.bf16.msra.mxu0 %v934_v8 }
  0x3e   :  { %937 = vmatprep.subr.bf16.mxu0 %v936_v10 }
  0x3f   :  { %967 = vmatpush3.bf16.msra.mxu1 %v966_v9 }
  0x40   :  { %969 = vmatprep.subr.bf16.mxu1 %v968_v14 }
  0x41   :  { %939 = vmatpush3.bf16.msra.mxu0 %v938_v17 }
  0x42   :  { %972 = vmatprep.subr.bf16.mxu0 %v1013_v22 }
  0x43   :  { %971 = vmatpush3.bf16.msra.mxu1 %v970_v18 }
  0x44   :  { %413 = vmatmul.mubr.f32.vlgmr.msra.gmra.mrb[2].mxu0 %v1368_v33  ;;  %975 = vmatprep.subr.bf16.mxu1 %v1013_v22 }
  0x45   :  { %974 = vmatpush3.bf16.msra.mxu0 %v973_v21  ;;  %830 = vmatprep.mubr.msk.f32.mxu0 %vm1014_vm0, %v1015_v23 }
  0x46   :  { %483 = vmatmul.mubr.f32.vlgmr.msra.gmra.mrb[2].mxu1 %v197_v45  ;;  %v575_v45 = vld [vmem:[%s1502_s5 + $0x10] sm:$0xff]  ;;  %s988_s5 = scalar_lea.vmem %s666_s21, 32 }
  0x47   :  { %841 = vmatprep.mubr.msk.f32.mxu1 %vm1014_vm0, %v1015_v23  ;;  %977 = vmatpush3.bf16.msra.mxu1 %v976_v26  ;;  %v979_v47 = vpack.c.bf16 %v576_v46, %v575_v45  ;;  %p989_p0 = scmp.ne.s32.totalorder %s666_s21, %s988_s5  ;;  %p994_p2 = scmp.lt.s32.totalorder %s988_s5, %s988_s5 }
  0x48   :  { %978 = vmatprep.subr.bf16.mxu1 %v1013_v22 }
  0x49   :  { %p995_p3 = por %p994_p2, %p993_p1 }
  0x4b   :  { %980 = vmatpush3.bf16.msra.mxu1 %v979_v47  ;;  %p996_p4 = pnand %p995_p3, %p989_p0 }
  0xf7   :  { %v710_v27 = vpop.f32.mrb[0].mxu0 }
  0xf8   :  { %v711_v29 = vpop.f32.mrb[1].mxu0 }
  0xf9   :  { %v745_v30 = vpop.f32.mrb[0].mxu1  ;;  %v712_v31 = vadd.f32 %v711_v29, %v710_v27 }
  0xfa   :  { %v746_v32 = vpop.f32.mrb[1].mxu1 }
  0xfb   :  { %v747_v33 = vadd.f32 %v746_v32, %v745_v30  ;;  %v275_v34 = vadd.f32 %v712_v31, %v673_v28 }
  0xfd   :  { %v345_v35 = vadd.f32 %v747_v33, %v275_v34 }
 0x117   :  { %v780_v36 = vpop.f32.mrb[2].mxu0 }
 0x118   :  { %v781_v37 = vpop.f32.mrb[3].mxu0 }
 0x119   :  { %v815_v38 = vpop.f32.mrb[2].mxu1  ;;  %v782_v39 = vadd.f32 %v781_v37, %v780_v36 }
 0x11a   :  { %v816_v40 = vpop.f32.mrb[3].mxu1 }
 0x11b   :  { %v817_v41 = vadd.f32 %v816_v40, %v815_v38  ;;  %v415_v42 = vadd.f32 %v782_v39, %v345_v35 }
 0x11d   :  { %v485_v43 = vadd.f32 %v817_v41, %v415_v42 }
 0x11f   :  { %v488_v44 = vmax.f32 %v485_v43, 0.0 }
 0x121   :  { %831 = vmatmul.mubr.msk.f32.vlgmr.msra.gmra.mrb[4].mxu0 %vm498_vm1, %v488_v44 }
 0x1f4   :  { %v568_v49 = vpop.f32.mrb[4].mxu0 }
 0x1f5   :  { %v569_v50 = vadd.f32 %v674_v48, %v568_v49  ;;  %v832_v51 = vpop.f32.mrb[5].mxu0 }
 0x1f7   :  { %v572_v13 = vmax.f32 %v569_v50, 0.0 }
 0x1f9   :  { %842 = vmatmul.mubr.msk.f32.vlgmr.msra.gmra.mrb[4].mxu1 %vm584_vm2, %v572_v13 }
 0x2cc   :  { %v654_v53 = vpop.f32.mrb[4].mxu1 }
 0x2cd   :  { %v655_v54 = vadd.f32 %v676_v52, %v654_v53  ;;  %v843_v55 = vpop.f32.mrb[5].mxu1 }
 0x2cf   :  { %658 = vst [vmem:[#allocation2] sm:$0x3] %v655_v54 }
 0x2d0   :  { %999 = shalt.err (!%p996_p4)
}
 0x2d1   :  { %s1000_s23 = scalar_lea.hbm %s1504_s7, 32 }
 0x2d2   :  { %p1001_p5 = scmp.ne.s32.totalorder %s1504_s7, %s1000_s23  ;;  %p1004_p6 = scmp.lt.u32.totalorder %s1000_s23, %s1504_s7 }
 0x2d4   :  { %p1006_p7 = pnand %p1004_p6, %p1001_p5 }
 0x2d6   :  { %1009 = shalt.err (!%p1006_p7)
}
 0x2d7   :  { %668 = dma.vmem_to_hbm [thread:$0]  %s666_s21, 32, %s1504_s7, [#allocation3]  }
 0x2d8   :  { %1010 = dma.done.wait [#allocation3], 32  }
 0x2d9   :  { %1011 = vsyncadd [#allocation3], 4294967264 }
 0x2da   :  { %672 = vsyncpa [#allocation3], 1 }

</bundles_post_ra>
